<compile_context>
chip_gen: v7x
topology: tpu7x:2x2x1
jax: 0.10.0
libtpu: 0.0.40
codegen_flags: <defaults>
</compile_context>

<pallas_src>
import functools

import jax
import jax.numpy as jnp
from jax import lax
from jax.experimental import pallas as pl
from jax.experimental.pallas import tpu as pltpu


# ----------------------------------------------------------------------------
# Stage 1: hoisted layer-0 input projection (all timesteps at once).
# ----------------------------------------------------------------------------
def _input_proj_kernel(x_ref, w_ref, b_ref, out_ref):
    # (TB, D) @ (D, 4H) + (1, 4H) -> (TB, 4H); bf16 MXU operands, f32 accum.
    out_ref[...] = (
        jnp.dot(x_ref[...].astype(jnp.bfloat16), w_ref[...],
                preferred_element_type=jnp.float32)
        + b_ref[...]
    )


# ----------------------------------------------------------------------------
# Stage 2: sequential 2-layer LSTM recurrence over (chunked) time.
# ----------------------------------------------------------------------------
def _lstm_recurrent_kernel(xg_ref, whh0_ref, w1_ref, b1_ref, out_ref,
                           h1_ref, c1_ref, h2_ref, c2_ref,
                           *, hidden, time_chunk):
    H = hidden
    chunk = pl.program_id(0)

    @pl.when(chunk == 0)
    def _():
        h1_ref[...] = jnp.zeros_like(h1_ref)
        c1_ref[...] = jnp.zeros_like(c1_ref)
        h2_ref[...] = jnp.zeros_like(h2_ref)
        c2_ref[...] = jnp.zeros_like(c2_ref)

    whh0 = whh0_ref[...]   # (H, 4H)  bf16
    w1 = w1_ref[...]       # (2H, 4H) bf16  (= [Wih1; Whh1] fused)
    b1 = b1_ref[...]       # (1, 4H)  f32

    def activate(gates):
        # Two full-width (B, 4H) EUP passes instead of four H-wide slices.
        sig = jax.nn.sigmoid(gates)
        tnh = jnp.tanh(gates)
        i = sig[:, 0 * H:1 * H]
        f = sig[:, 1 * H:2 * H]
        g = tnh[:, 2 * H:3 * H]
        o = sig[:, 3 * H:4 * H]
        return i, f, g, o

    def step(t, carry):
        h1, c1, h2, c2 = carry
        # Layer 0: input projection was precomputed -> only the recurrent term.
        gates0 = xg_ref[t] + jnp.dot(h1.astype(jnp.bfloat16), whh0,
                                     preferred_element_type=jnp.float32)
        i0, f0, g0, o0 = activate(gates0)
        c1 = f0 * c1 + i0 * g0
        h1 = o0 * jnp.tanh(c1)
        # Layer 1: single fused matmul [h1, h2] @ [Wih1; Whh1].
        inp1 = jnp.concatenate([h1, h2], axis=-1).astype(jnp.bfloat16)
        gates1 = jnp.dot(inp1, w1, preferred_element_type=jnp.float32) + b1
        i1, f1, g1, o1 = activate(gates1)
        c2 = f1 * c2 + i1 * g1
        h2 = o1 * jnp.tanh(c2)
        return h1, c1, h2, c2

    carry0 = (h1_ref[...], c1_ref[...], h2_ref[...], c2_ref[...])
    h1, c1, h2, c2 = lax.fori_loop(0, time_chunk, step, carry0, unroll=True)
    h1_ref[...] = h1
    c1_ref[...] = c1
    h2_ref[...] = h2
    c2_ref[...] = c2

    # Single output store at the very end (not one masked store per timestep).
    @pl.when(chunk == pl.num_programs(0) - 1)
    def _():
        out_ref[...] = h2.astype(out_ref.dtype)


# ----------------------------------------------------------------------------
# Wrapper
# ----------------------------------------------------------------------------
def video_lstm_forward(x, params, hidden_size, *, time_chunk=None):
    """x: (B, T, D) float32.  Returns (B, H) = last-timestep hidden of layer 2."""
    B, T, D = x.shape
    H = hidden_size

    # Pad batch to a full sublane tile (multiple of 8); padded rows are
    # independent and dropped at the end.
    B_pad = -(-B // 8) * 8
    if B_pad != B:
        x = jnp.concatenate([x, jnp.zeros((B_pad - B, T, D), x.dtype)], axis=0)

    if time_chunk is None:
        time_chunk = T  # whole sequence in one grid invocation for small T
    assert T % time_chunk == 0
    num_chunks = T // time_chunk

    # bf16 weights for MXU; biases / accumulation / state stay f32.
    wih0 = params["wih0"].astype(jnp.bfloat16)                       # (D, 4H)
    whh0 = params["whh0"].astype(jnp.bfloat16)                       # (H, 4H)
    b0 = params["b0"]                                                # (1, 4H)
    w1 = jnp.concatenate([params["wih1"], params["whh1"]],
                         axis=0).astype(jnp.bfloat16)                # (2H, 4H)
    b1 = params["b1"]                                                # (1, 4H)

    # ---- Stage 1: layer-0 pre-gates for all timesteps as one big matmul ----
    x_tbd = jnp.transpose(x, (1, 0, 2)).reshape(T * B_pad, D)        # (T*B, D)
    TB = T * B_pad
    pregates = pl.pallas_call(
        _input_proj_kernel,
        out_shape=jax.ShapeDtypeStruct((TB, 4 * H), jnp.float32),
        grid=(1,),
        in_specs=[
            pl.BlockSpec((TB, D), lambda i: (0, 0)),
            pl.BlockSpec((D, 4 * H), lambda i: (0, 0)),
            pl.BlockSpec((1, 4 * H), lambda i: (0, 0)),
        ],
        out_specs=pl.BlockSpec((TB, 4 * H), lambda i: (0, 0)),
        compiler_params=pltpu.CompilerParams(
            dimension_semantics=("arbitrary",)),
    )(x_tbd, wih0, b0)
    pregates = pregates.reshape(T, B_pad, 4 * H)

    # ---- Stage 2: recurrence, one grid step per time-chunk -----------------
    kernel = functools.partial(_lstm_recurrent_kernel,
                               hidden=H, time_chunk=time_chunk)
    wmap = lambda c: (0, 0)
    out = pl.pallas_call(
        kernel,
        out_shape=jax.ShapeDtypeStruct((B_pad, H), x.dtype),
        grid_spec=pltpu.PrefetchScalarGridSpec(
            num_scalar_prefetch=0,
            grid=(num_chunks,),
            in_specs=[
                pl.BlockSpec((time_chunk, B_pad, 4 * H), lambda c: (c, 0, 0)),
                pl.BlockSpec((H, 4 * H), wmap),      # whh0
                pl.BlockSpec((2 * H, 4 * H), wmap),  # [wih1; whh1]
                pl.BlockSpec((1, 4 * H), wmap),      # b1
            ],
            out_specs=pl.BlockSpec((B_pad, H), wmap),
            scratch_shapes=[pltpu.VMEM((B_pad, H), jnp.float32)] * 4,
        ),
        compiler_params=pltpu.CompilerParams(
            dimension_semantics=("arbitrary",)),
    )(pregates, whh0, w1, b1)
    return out[:B]


def init_params(key, input_size, hidden_size):
    """Deterministic init matching nn.LSTM parameter shapes.

    PyTorch stores W_ih (4H, in), W_hh (4H, H), b_ih (4H,), b_hh (4H,);
    we pre-transpose to (in, 4H)/(H, 4H) and fuse the two biases.
    """
    H = hidden_size
    bound = 1.0 / (H ** 0.5)
    ks = jax.random.split(key, 8)
    u = lambda k, shape: jax.random.uniform(k, shape, jnp.float32, -bound, bound)
    wih0 = u(ks[0], (4 * H, input_size)).T
    whh0 = u(ks[1], (4 * H, H)).T
    b0 = (u(ks[2], (4 * H,)) + u(ks[3], (4 * H,))).reshape(1, 4 * H)
    wih1 = u(ks[4], (4 * H, H)).T
    whh1 = u(ks[5], (4 * H, H)).T
    b1 = (u(ks[6], (4 * H,)) + u(ks[7], (4 * H,))).reshape(1, 4 * H)
    return dict(wih0=wih0, whh0=whh0, b0=b0, wih1=wih1, whh1=whh1, b1=b1)


def _reference_forward(x, params, hidden_size):
    """Pure-JAX f32 reference (lax.scan) for numerical verification."""
    B, T, D = x.shape
    H = hidden_size

    def cell(x_t, h, c, wih, whh, b):
        g = x_t @ wih + h @ whh + b
        i = jax.nn.sigmoid(g[:, 0 * H:1 * H])
        f = jax.nn.sigmoid(g[:, 1 * H:2 * H])
        gg = jnp.tanh(g[:, 2 * H:3 * H])
        o = jax.nn.sigmoid(g[:, 3 * H:4 * H])
        c_new = f * c + i * gg
        return o * jnp.tanh(c_new), c_new

    def step(carry, x_t):
        h1, c1, h2, c2 = carry
        h1, c1 = cell(x_t, h1, c1, params["wih0"], params["whh0"], params["b0"])
        h2, c2 = cell(h1, h2, c2, params["wih1"], params["whh1"], params["b1"])
        return (h1, c1, h2, c2), None

    z = jnp.zeros((B, H), jnp.float32)
    (h1, c1, h2, c2), _ = lax.scan(step, (z, z, z, z),
                                   jnp.transpose(x, (1, 0, 2)))
    return h2


if __name__ == "__main__":
    # Small shapes consistent with the module: batch=2, seq=8, input=16, hidden=32.
    B, T, D, H = 2, 8, 16, 32
    key = jax.random.PRNGKey(0)
    k_x, k_p = jax.random.split(key)
    x = jax.random.normal(k_x, (B, T, D), jnp.float32)
    params = init_params(k_p, D, H)

    out = jax.block_until_ready(video_lstm_forward(x, params, H))
    ref = jax.block_until_ready(_reference_forward(x, params, H))

    assert out.shape == (B, H)
    # bf16 MXU operands vs f32 reference -> slightly looser tolerance.
    assert jnp.allclose(out, ref, atol=2e-2, rtol=2e-2), "mismatch vs reference"
    print("KERNEL_OK")
</pallas_src>

<mosaic_0001>
module attributes {stable_mosaic.version = 11 : i64} {
  func.func @_input_proj_kernel(%arg0: i32, %arg1: memref<64x16xf32, #tpu.memory_space<vmem>>, %arg2: memref<16x128xbf16, #tpu.memory_space<vmem>>, %arg3: memref<1x128xf32, #tpu.memory_space<vmem>>, %arg4: memref<64x128xf32, #tpu.memory_space<vmem>>) attributes {dimension_semantics = [#tpu.dimension_semantics<arbitrary>], iteration_bounds = array<i64: 1>, scalar_prefetch = 0 : i64, scratch_operands = 0 : i64, tpu.core_type = #tpu.core_type<tc>, window_params = [{pipeline_mode = #tpu.pipeline_mode<synchronous>, transform_indices = @transform_0, window_bounds = array<i64: 64, 16>}, {pipeline_mode = #tpu.pipeline_mode<synchronous>, transform_indices = @transform_1, window_bounds = array<i64: 16, 128>}, {pipeline_mode = #tpu.pipeline_mode<synchronous>, transform_indices = @transform_2, window_bounds = array<i64: 1, 128>}, {pipeline_mode = #tpu.pipeline_mode<synchronous>, transform_indices = @transform_3, window_bounds = array<i64: 64, 128>}]} {
    %c0 = arith.constant 0 : index
    %c0_0 = arith.constant 0 : index
    %0 = vector.load %arg1[%c0, %c0_0] : memref<64x16xf32, #tpu.memory_space<vmem>>, vector<64x16xf32>
    %1 = arith.truncf %0 : vector<64x16xf32> to vector<64x16xbf16>
    %c0_1 = arith.constant 0 : index
    %c0_2 = arith.constant 0 : index
    %2 = vector.load %arg2[%c0_1, %c0_2] : memref<16x128xbf16, #tpu.memory_space<vmem>>, vector<16x128xbf16>
    %cst = arith.constant dense<0.000000e+00> : vector<64x128xf32>
    %3 = tpu.matmul %1, %2, %cst {dimension_numbers = #tpu.dot_dimension_numbers<[1], [0], [0], [1], [0, 0, 1, 1], [], []>} : vector<64x16xbf16>, vector<16x128xbf16>, vector<64x128xf32> -> vector<64x128xf32>
    %c0_3 = arith.constant 0 : index
    %c0_4 = arith.constant 0 : index
    %4 = vector.load %arg3[%c0_3, %c0_4] : memref<1x128xf32, #tpu.memory_space<vmem>>, vector<1x128xf32>
    %5 = vector.broadcast %4 : vector<1x128xf32> to vector<64x128xf32>
    %6 = arith.addf %3, %5 : vector<64x128xf32>
    %c0_5 = arith.constant 0 : index
    %c0_6 = arith.constant 0 : index
    %7 = vector.load %arg4[%c0_5, %c0_6] : memref<64x128xf32, #tpu.memory_space<vmem>>, vector<64x128xf32>
    tpu.vector_store %arg4[%c0_5, %c0_6], %6 {strides = array<i32>} : memref<64x128xf32, #tpu.memory_space<vmem>>, vector<64x128xf32>,
    return
  }
  func.func @transform_0(%arg0: i32) -> (i32, i32) {
    %c0_i32 = arith.constant 0 : i32
    %c0_i32_0 = arith.constant 0 : i32
    %c0_i32_1 = arith.constant 0 : i32
    return %c0_i32, %c0_i32_0 : i32, i32
  }
  func.func @transform_1(%arg0: i32) -> (i32, i32) {
    %c0_i32 = arith.constant 0 : i32
    %c0_i32_0 = arith.constant 0 : i32
    %c0_i32_1 = arith.constant 0 : i32
    return %c0_i32, %c0_i32_0 : i32, i32
  }
  func.func @transform_2(%arg0: i32) -> (i32, i32) {
    %c0_i32 = arith.constant 0 : i32
    %c0_i32_0 = arith.constant 0 : i32
    %c0_i32_1 = arith.constant 0 : i32
    return %c0_i32, %c0_i32_0 : i32, i32
  }
  func.func @transform_3(%arg0: i32) -> (i32, i32) {
    %c0_i32 = arith.constant 0 : i32
    %c0_i32_0 = arith.constant 0 : i32
    %c0_i32_1 = arith.constant 0 : i32
    return %c0_i32, %c0_i32_0 : i32, i32
  }
}

</mosaic_0001>

<bundles_post_ra>
// kernel: tpu_custom_call.1
= control target key start
LH: loop header
LB: loop body
LE: loop exit
PB: predicated region body
PF: predicated region fallthrough
CT: control target
= control target key end

     0   :  { %vm43_vm0 = vcmask 130048   ;;  %s265_s0 = inlined_call_operand.vmem [shape: f32[64,16], index: 0, kind: input, shape index: {}]   ;;  %s266_s1 = inlined_call_operand.vmem [shape: bf16[16,128], index: 1, kind: input, shape index: {}]   ;;  %s267_s2 = inlined_call_operand.vmem [shape: f32[1,128], index: 2, kind: input, shape index: {}]   ;;  %s268_s3 = inlined_call_operand.hbm [shape: f32[64,128], index: 3, kind: output, shape index: {}]  }
   0x1   :  { %v171_v0 = vld [vmem:[%s266_s1] sm:$0xff]   ;;  %v17_v2 = vld [vmem:[%s265_s0 + $0x8] sm:$0xff]  ;;  %v18_v6 = vld [vmem:[%s265_s0 + $0x10] sm:$0xff] }
   0x2   :  { %v16_v1 = vld [vmem:[%s265_s0] sm:$0xff]  ;;  %156 = vmatprep.subr.bf16.mxu0 %v171_v0  ;;  %166 = vmatprep.subr.bf16.mxu1 %v171_v0  ;;  %v21_v5 = vld [vmem:[%s265_s0 + $0x28] sm:$0xff]  ;;  %v19_v7 = vld [vmem:[%s265_s0 + $0x18] sm:$0xff] }
   0x3   :  { %v20_v3 = vld [vmem:[%s265_s0 + $0x20] sm:$0xff]  ;;  %v24_v4 = vpack.c.bf16 %v17_v2, %v16_v1  ;;  %157 = vmatpush3.bf16.msra.mxu0 %v171_v0  ;;  %167 = vmatpush3.bf16.msra.mxu1 %v171_v0  ;;  %v25_v9 = vpack.c.bf16 %v19_v7, %v18_v6  ;;  %v22_v10 = vld [vmem:[%s265_s0 + $0x30] sm:$0xff]  ;;  %v23_v11 = vld [vmem:[%s265_s0 + $0x38] sm:$0xff] }
   0x4   :  { %v26_v8 = vpack.c.bf16 %v21_v5, %v20_v3 }
   0x5   :  { %8 = vsyncpa [#allocation3], 0  ;;  %158 = vmatprep.mubr.msk.bf16.mxu0 %vm43_vm0, %v24_v4  ;;  %v27_v12 = vpack.c.bf16 %v23_v11, %v22_v10  ;;  %v145_v13 = vld [vmem:[%s267_s2] ss:$0 sm:$0xff]  ;;  %s196_s4 = smov [#allocation2]  }
   0x6   :  { %162 = vmatprep.mubr.msk.bf16.mxu1 %vm43_vm0, %v26_v8  ;;  %159 = vmatmul.mubr.msk.bf16.vlgmr.msra.gmra.mrb[0].mxu0 %vm43_vm0, %v25_v9  ;;  %s134_s5 = sshll.u32 %s196_s4, 4  ;;  %s135_s5 = int_to_ptr.vmem [resolvable:$true] %s134_s5 }
   0x7   :  { %163 = vmatmul.mubr.msk.bf16.vlgmr.msra.gmra.mrb[0].mxu1 %vm43_vm0, %v27_v12  ;;  %s172_s0 = scalar_lea.vmem %s135_s5, 1024  ;;  %p177_p1 = scmp.lt.s32.totalorder %s135_s5, %s135_s5 }
   0x8   :  { %p173_p0 = scmp.ne.s32.totalorder %s135_s5, %s172_s0  ;;  %p178_p2 = scmp.lt.s32.totalorder %s172_s0, %s172_s0 }
   0xa   :  { %p179_p3 = por %p178_p2, %p177_p1 }
   0xc   :  { %p180_p4 = pnand %p179_p3, %p173_p0 }
  0xd9   :  { %v160_v14 = vpop.f32.mrb[0].mxu0 }
  0xda   :  { %v164_v15 = vpop.f32.mrb[0].mxu1  ;;  %v99_v16 = vadd.f32 %v160_v14, %v145_v13  ;;  %v90_v18 = vpop.f32.mrb[1].mxu0 }
  0xdb   :  { %v115_v17 = vadd.f32 %v164_v15, %v145_v13  ;;  %v106_v19 = vpop.f32.mrb[1].mxu1  ;;  %v91_v20 = vadd.f32 %v145_v13, %v90_v18  ;;  %v161_v22 = vpop.f32.mrb[2].mxu0 }
  0xdc   :  { %v107_v21 = vadd.f32 %v145_v13, %v106_v19  ;;  %v165_v23 = vpop.f32.mrb[2].mxu1  ;;  %123 = vst [vmem:[#allocation2 + $0x10] sm:$0xff] %v99_v16  ;;  %v102_v24 = vadd.f32 %v161_v22, %v145_v13  ;;  %v93_v26 = vpop.f32.mrb[3].mxu0 }
  0xdd   :  { %127 = vst [vmem:[#allocation2 + $0x30] sm:$0xff] %v115_v17  ;;  %v118_v25 = vadd.f32 %v165_v23, %v145_v13  ;;  %v109_v27 = vpop.f32.mrb[3].mxu1  ;;  %121 = vst [vmem:[#allocation2] sm:$0xff] %v91_v20  ;;  %v94_v28 = vadd.f32 %v145_v13, %v93_v26 }
  0xde   :  { %125 = vst [vmem:[#allocation2 + $0x20] sm:$0xff] %v107_v21  ;;  %v110_v29 = vadd.f32 %v145_v13, %v109_v27  ;;  %124 = vst [vmem:[#allocation2 + $0x18] sm:$0xff] %v102_v24 }
  0xdf   :  { %128 = vst [vmem:[#allocation2 + $0x38] sm:$0xff] %v118_v25  ;;  %122 = vst [vmem:[#allocation2 + $0x8] sm:$0xff] %v94_v28 }
  0xe0   :  { %126 = vst [vmem:[#allocation2 + $0x28] sm:$0xff] %v110_v29 }
  0xe1   :  { %183 = shalt.err (!%p180_p4)
}
  0xe2   :  { %s184_s7 = scalar_lea.hbm %s268_s3, 1024 }
  0xe3   :  { %p185_p5 = scmp.ne.s32.totalorder %s268_s3, %s184_s7  ;;  %p188_p6 = scmp.lt.u32.totalorder %s184_s7, %s268_s3 }
  0xe5   :  { %p190_p7 = pnand %p188_p6, %p185_p5 }
  0xe7   :  { %193 = shalt.err (!%p190_p7)
}
  0xe8   :  { %s197_s12 = smov 128   ;;  %s198_s13 = smov 8  }
  0xe9   :  { %140 = dma.vmem_to_hbm [thread:$0]  %s135_s5, 1024, %s268_s3, [#allocation3], %s197_s12, %s197_s12, %s198_s13  }
  0xea   :  { %194 = dma.done.wait [#allocation3], 1024  }
  0xeb   :  { %195 = vsyncadd [#allocation3], 4294966272 }
  0xec   :  { %144 = vsyncpa [#allocation3], 1 }

</bundles_post_ra>
